<compile_context>
chip_gen: v6e
topology: v6e:2x2x1
jax: 0.10.0
libtpu: 0.0.40
codegen_flags: <defaults>
</compile_context>

<pallas_src>
import jax
import jax.numpy as jnp
from jax.experimental import pallas as pl
from jax.experimental.pallas import tpu as pltpu


def _round_up(x, m):
    return ((x + m - 1) // m) * m


def conv1x1_kernel(x_ref, w_ref, b_ref, o_ref):
    # x_ref: (Nb, C_in, TP)  w_ref: (C_out, C_in)  b_ref: (C_out, 1)  o_ref: (Nb, C_out, TP)
    # Mem-bound kernel; MXU shape is irrelevant. Keep f32 accumulation.
    nb = x_ref.shape[0]
    if nb == 1:
        # Common large-HW path: plain 2-D MXU matmul.
        acc = jnp.dot(w_ref[...], x_ref[0], preferred_element_type=jnp.float32)
        o_ref[0] = (acc + b_ref[...]).astype(o_ref.dtype)
    else:
        # Batch-blocked path (small H*W): one batched matmul over the Nb images in
        # this step.  Broadcasting the tiny weight avoids the (o,b,p)->(b,o,p)
        # transpose a plain 'oc,bcp->bop' einsum would materialize.
        w_b = jnp.broadcast_to(w_ref[...][None], (nb,) + w_ref.shape)
        acc = jnp.einsum("boc,bcp->bop", w_b, x_ref[...],
                         preferred_element_type=jnp.float32)
        o_ref[...] = (acc + b_ref[...]).astype(o_ref.dtype)


def _choose_tiling(N, C_in, C_out, HW, itemsize,
                   tile_vmem_budget=16 * 1024 * 1024, max_tp=16384):
    """Pick (images-per-step Nb, pixel tile tp, padded pixel extent hw_eff)."""
    # Lane-dense stores: sub-128 pixel extents get zero-padded to 128 in the wrapper.
    hw_eff = 128 if HW < 128 else HW

    # Channel-aware pixel tile: double-buffered x tile + out tile ~= budget.
    per_pixel = 2 * (_round_up(C_in, 8) + _round_up(C_out, 8)) * itemsize
    tp_budget = tile_vmem_budget // max(per_pixel, 1)
    tp_budget = max(128, min(max_tp, (tp_budget // 128) * 128))

    if hw_eff <= tp_budget:
        # Small feature map: one pixel block spans the whole (padded) map; amortize
        # the per-step overhead by packing Nb images into each grid step.
        tp = hw_eff
        nb = min(N, max(1, tp_budget // _round_up(hw_eff, 128)))
    else:
        tp = tp_budget
        nb = 1

    # Keep >= 2 grid steps along a parallel axis so both v7x TensorCores stream
    # (measured no-op on single-TC v5e/v6e).
    batch_steps = -(-N // nb)
    pix_steps = -(-hw_eff // tp)
    if batch_steps * pix_steps < 2:
        if N > 1:
            nb = max(1, (N + 1) // 2)          # -> at least 2 batch steps
        elif hw_eff >= 256:
            tp = _round_up(-(-hw_eff // 2), 128)  # -> 2 pixel steps
        # else: single tiny step; nothing worth splitting.
    return nb, tp, hw_eff


def _vmem_limit_bytes(nb, tp, C_in, C_out, itemsize):
    """Size the scoped-VMEM limit to the actual tile requirement (+ margin),
    clamped to [32 MiB, 48 MiB] which is safe on v5e/v6e (128 MiB) and v7x (64 MiB)."""
    tp_al = _round_up(tp, 128)
    need = (2 * nb * _round_up(C_in, 8) * tp_al * itemsize        # x, double-buffered
            + 2 * nb * _round_up(C_out, 8) * tp_al * itemsize     # out, double-buffered
            + 2 * _round_up(C_out, 8) * _round_up(C_in, 128) * itemsize   # weight
            + 2 * _round_up(C_out, 8) * 128 * itemsize)                    # bias
    return int(min(max(32 * 1024 * 1024, need * 5 // 4 + (2 << 20)),
                   48 * 1024 * 1024))


def outconv_forward(x_nchw, weight, bias, *, tile_vmem_budget=16 * 1024 * 1024):
    """Equivalent of nn.Conv2d(in_ch, out_ch, kernel_size=1) on NCHW input.

    x_nchw : (N, C_in, H, W)
    weight : (C_out, C_in, 1, 1)   (PyTorch layout)
    bias   : (C_out,)
    returns: (N, C_out, H, W)
    """
    N, C_in, H, W = x_nchw.shape
    C_out = weight.shape[0]
    HW = H * W
    itemsize = jnp.dtype(x_nchw.dtype).itemsize

    nb, tp, hw_eff = _choose_tiling(N, C_in, C_out, HW, itemsize, tile_vmem_budget)

    # Glue: free reshapes only (no transposes); optional lane-padding for HW < 128.
    x3d = x_nchw.reshape(N, C_in, HW)
    if hw_eff != HW:
        x3d = jnp.pad(x3d, ((0, 0), (0, 0), (0, hw_eff - HW)))
    w2d = weight.reshape(C_out, C_in)
    b2d = bias.reshape(C_out, 1)

    grid = (pl.cdiv(N, nb), pl.cdiv(hw_eff, tp))   # tails masked by Pallas

    out3d = pl.pallas_call(
        conv1x1_kernel,
        out_shape=jax.ShapeDtypeStruct((N, C_out, hw_eff), x_nchw.dtype),
        grid_spec=pltpu.PrefetchScalarGridSpec(
            num_scalar_prefetch=0,
            grid=grid,
            in_specs=[
                # Nb images x full channels x lane-dense pixel tile.
                pl.BlockSpec((nb, C_in, tp), lambda n, p: (n, 0, p)),
                # Weight / bias stay resident across the whole grid (constant index).
                pl.BlockSpec((C_out, C_in), lambda n, p: (0, 0)),
                pl.BlockSpec((C_out, 1), lambda n, p: (0, 0)),
            ],
            out_specs=pl.BlockSpec((nb, C_out, tp), lambda n, p: (n, 0, p)),
        ),
        compiler_params=pltpu.CompilerParams(
            # Both axes independent -> shard across TensorCores (v7x megacore).
            dimension_semantics=("parallel", "parallel"),
            vmem_limit_bytes=_vmem_limit_bytes(nb, tp, C_in, C_out, itemsize),
        ),
    )(x3d, w2d, b2d)

    if hw_eff != HW:
        out3d = out3d[:, :, :HW]
    return out3d.reshape(N, C_out, H, W)


def init_outconv_params(key, in_ch, out_ch, dtype=jnp.float32):
    """Deterministic init matching the PyTorch module's init_weights:
    xavier_uniform_ on the conv weight, bias filled with 0.01."""
    fan_in = in_ch * 1 * 1
    fan_out = out_ch * 1 * 1
    bound = (6.0 / (fan_in + fan_out)) ** 0.5
    weight = jax.random.uniform(
        key, (out_ch, in_ch, 1, 1), dtype=dtype, minval=-bound, maxval=bound)
    bias = jnp.full((out_ch,), 0.01, dtype=dtype)
    return weight, bias


if __name__ == "__main__":
    key = jax.random.PRNGKey(0)
    k_x, k_w, k_x2, k_w2 = jax.random.split(key, 4)

    # Case 1: HW multiple of 128, Nb == 1 path (plain 2-D MXU dot).
    N, C_in, H, W = 2, 4, 16, 16
    C_out = 8
    x = jax.random.normal(k_x, (N, C_in, H, W), dtype=jnp.float32)
    weight, bias = init_outconv_params(k_w, C_in, C_out)

    out = jax.jit(outconv_forward)(x, weight, bias)
    jax.block_until_ready(out)
    ref = jnp.einsum("nchw,oc->nohw", x, weight.reshape(C_out, C_in)) \
        + bias.reshape(1, C_out, 1, 1)
    assert out.shape == (N, C_out, H, W)
    assert jnp.allclose(out, ref, atol=1e-5, rtol=1e-5)

    # Case 2: HW < 128 (lane padding) + batch-blocked path (Nb > 1, batched matmul).
    N2, C_in2, H2, W2, C_out2 = 4, 3, 10, 10, 2
    x2 = jax.random.normal(k_x2, (N2, C_in2, H2, W2), dtype=jnp.float32)
    weight2, bias2 = init_outconv_params(k_w2, C_in2, C_out2)

    out2 = jax.jit(outconv_forward)(x2, weight2, bias2)
    jax.block_until_ready(out2)
    ref2 = jnp.einsum("nchw,oc->nohw", x2, weight2.reshape(C_out2, C_in2)) \
        + bias2.reshape(1, C_out2, 1, 1)
    assert out2.shape == (N2, C_out2, H2, W2)
    assert jnp.allclose(out2, ref2, atol=1e-5, rtol=1e-5)

    print("KERNEL_OK")
</pallas_src>

<mosaic_0001>
module attributes {stable_mosaic.version = 11 : i64} {
  func.func @conv1x1_kernel(%arg0: i32, %arg1: i32, %arg2: memref<1x4x256xf32, #tpu.memory_space<vmem>>, %arg3: memref<8x4xf32, #tpu.memory_space<vmem>>, %arg4: memref<8x1xf32, #tpu.memory_space<vmem>>, %arg5: memref<1x8x256xf32, #tpu.memory_space<vmem>>) attributes {dimension_semantics = [#tpu.dimension_semantics<parallel>, #tpu.dimension_semantics<parallel>], iteration_bounds = array<i64: 2, 1>, scalar_prefetch = 0 : i64, scratch_operands = 0 : i64, tpu.core_type = #tpu.core_type<tc>, window_params = [{transform_indices = @transform_0, window_bounds = array<i64: 1, 4, 256>}, {pipeline_mode = #tpu.pipeline_mode<synchronous>, transform_indices = @transform_1, window_bounds = array<i64: 8, 4>}, {pipeline_mode = #tpu.pipeline_mode<synchronous>, transform_indices = @transform_2, window_bounds = array<i64: 8, 1>}, {transform_indices = @transform_3, window_bounds = array<i64: 1, 8, 256>}]} {
    %c0 = arith.constant 0 : index
    %c0_0 = arith.constant 0 : index
    %0 = vector.load %arg3[%c0, %c0_0] : memref<8x4xf32, #tpu.memory_space<vmem>>, vector<8x4xf32>
    %c0_1 = arith.constant 0 : index
    %c0_2 = arith.constant 0 : index
    %c0_3 = arith.constant 0 : index
    %1 = vector.load %arg2[%c0_1, %c0_2, %c0_3] : memref<1x4x256xf32, #tpu.memory_space<vmem>>, vector<1x4x256xf32>
    %2 = vector.shape_cast %1 : vector<1x4x256xf32> to vector<4x256xf32>
    %cst = arith.constant dense<0.000000e+00> : vector<8x256xf32>
    %3 = tpu.matmul %0, %2, %cst {dimension_numbers = #tpu.dot_dimension_numbers<[1], [0], [0], [1], [0, 0, 1, 1], [], []>} : vector<8x4xf32>, vector<4x256xf32>, vector<8x256xf32> -> vector<8x256xf32>
    %c0_4 = arith.constant 0 : index
    %c0_5 = arith.constant 0 : index
    %4 = vector.load %arg4[%c0_4, %c0_5] : memref<8x1xf32, #tpu.memory_space<vmem>>, vector<8x1xf32>
    %5 = vector.broadcast %4 : vector<8x1xf32> to vector<8x256xf32>
    %6 = arith.addf %3, %5 : vector<8x256xf32>
    %c0_6 = arith.constant 0 : index
    %c0_7 = arith.constant 0 : index
    %c0_8 = arith.constant 0 : index
    %7 = vector.load %arg5[%c0_6, %c0_7, %c0_8] : memref<1x8x256xf32, #tpu.memory_space<vmem>>, vector<1x8x256xf32>
    %8 = vector.shape_cast %7 : vector<1x8x256xf32> to vector<8x256xf32>
    %9 = vector.shape_cast %6 : vector<8x256xf32> to vector<1x8x256xf32>
    tpu.vector_store %arg5[%c0_6, %c0_7, %c0_8], %9 {strides = array<i32>} : memref<1x8x256xf32, #tpu.memory_space<vmem>>, vector<1x8x256xf32>,
    return
  }
  func.func @transform_0(%arg0: i32, %arg1: i32) -> (i32, i32, i32) {
    %c0_i32 = arith.constant 0 : i32
    %c0_i32_0 = arith.constant 0 : i32
    return %arg0, %c0_i32, %arg1 : i32, i32, i32
  }
  func.func @transform_1(%arg0: i32, %arg1: i32) -> (i32, i32) {
    %c0_i32 = arith.constant 0 : i32
    %c0_i32_0 = arith.constant 0 : i32
    %c0_i32_1 = arith.constant 0 : i32
    return %c0_i32, %c0_i32_0 : i32, i32
  }
  func.func @transform_2(%arg0: i32, %arg1: i32) -> (i32, i32) {
    %c0_i32 = arith.constant 0 : i32
    %c0_i32_0 = arith.constant 0 : i32
    %c0_i32_1 = arith.constant 0 : i32
    return %c0_i32, %c0_i32_0 : i32, i32
  }
  func.func @transform_3(%arg0: i32, %arg1: i32) -> (i32, i32, i32) {
    %c0_i32 = arith.constant 0 : i32
    %c0_i32_0 = arith.constant 0 : i32
    return %arg0, %c0_i32, %arg1 : i32, i32, i32
  }
}

</mosaic_0001>

<bundles_post_ra>
// kernel: outconv_forward.1
= control target key start
LH: loop header
LB: loop body
LE: loop exit
PB: predicated region body
PF: predicated region fallthrough
CT: control target
= control target key end

     0   :  { %s479_s12 = smov 0   ;;  %s481_s13 = smov 0   ;;  %s518_s0 = inlined_call_operand.vmem [shape: f32[2,4,256], index: 0, kind: input, shape index: {}]   ;;  %s519_s1 = inlined_call_operand.vmem [shape: f32[8,4], index: 1, kind: input, shape index: {}]   ;;  %s520_s2 = inlined_call_operand.vmem [shape: f32[8,1], index: 2, kind: input, shape index: {}]   ;;  %s521_s3 = inlined_call_operand.vmem [shape: f32[2,8,256], index: 3, kind: output, shape index: {}]  }
   0x1   :  { %s483_s14 = smov 0  }
   0x2 LB: > { %s25_s15 = sadd.s32 1, %s451_s13  ;;  %p393_p0 = scmp.ge.s32.totalorder %s455_s14, 1  ;;  %s455_s14 = sphi %s483_s14, %s13_s14   ;;  %s451_s13 = sphi %s481_s13, %s523_s13   ;;  %s447_s12 = sphi %s479_s12, %s522_s12  }
   0x3   : > { %p27_p1 = scmp.ge.s32.totalorder %s25_s15, 2  ;;  %p158_p2 = scmp.lt.s32.totalorder %s455_s14, 3 }
   0x5   : > { %s525_s15 = smov (%p27_p1, %s25_s15), 0  ;;  %p159_p3 = pnand %p393_p0, %p158_p2 }
   0x6   : > { %p191_p4 = scmp.lt.s32.totalorder (!%p159_p3), %s447_s12, 1 }
   0x7   : > { %162 = sbr.rel (%p159_p3) target bundleno = 218 (0xda), region = 32 }
   0xc   : > { %v457_v0 = vmov 0.0   ;;  %v458_v1 = vmov 0   ;;  %v212_v2 = vld [vmem:[%s520_s2] sm:$0xff]  ;;  %s527_s12 = smov (!%p191_p4, %s447_s12), 1  ;;  %vm224_vm0 = vcmask 1043456   ;;  %vm220_vm1 = vcmask 31744  }
   0xd   : > { %293 = vmatprep.mubr.f32.mxu0 %v457_v0  ;;  %431 = vset.pattern.permute.xlu0 %v458_v1  ;;  %s403_s18 = sshll.u32 %s527_s12, 3  ;;  %v210_v5 = vld [vmem:[%s519_s1] sm:$0xff]  ;;  %s404_s24 = sshll.u32 %s527_s12, 4 }
   0xe   : > { %215 = vperm.xlu0 %431, %v212_v2   ;;  %s198_s21 = scalar_lea.vmem %s518_s0, %s403_s18  ;;  %s208_s27 = scalar_lea.vmem %s521_s3, %s404_s24 }
   0xf   : > { %v211_v3 = vld [vmem:[%s198_s21] sm:$0xff] }
  0x10   : > { %v219_v4 = vcombine.high %v211_v3, %v211_v3 }
  0x12   : > { %398 = vmatprep.subr.msk.mxu0 %vm224_vm0, %v219_v4 }
  0x13   : > { %399 = vmatpush1.msk.msra.mxu0 %vm224_vm0, %v211_v3 }
  0x14   : > { %400 = vmatmul.mubr.msk.f32.vlgmr.msra.gmra.mxu0 %vm220_vm1, %v210_v5 }
  0x89   : > { %v216_v6 = vpop.permute.xlu0 %215 }
  0xd4   : > { %v295_v7 = vpop.f32.mrf.mxu0 }
  0xd5   : > { %v296_v8 = vadd.f32 %v295_v7, %v216_v6 }
  0xd6   : > { %v297_v9 = vpop.f32.mrf.mxu0 }
  0xd7   : > { %300 = vst [vmem:[%s208_s27] sm:$0xff] %v296_v8  ;;  %v298_v10 = vadd.f32 %v297_v9, %v216_v6 }
  0xd9   : > { %301 = vst [vmem:[%s208_s27 + $0x8] sm:$0xff] %v298_v10 }
  0xda PF: > { %s13_s14 = sadd.s32 1, %s455_s14   ;;  %s522_s12 = smov %s451_s13 }
  0xdb   : > { %p10_p5 = scmp.ge.s32.totalorder %s13_s14, 4   ;;  %s523_s13 = smov %s525_s15 }
  0xdd   :  { %12 = sbr.rel (!%p10_p5) target bundleno = 2 (0x2), region = 62 }

</bundles_post_ra>
